<compile_context>
chip_gen: v6e
topology: v6e:2x2x1
jax: 0.10.0
libtpu: 0.0.40
codegen_flags: <defaults>
</compile_context>

<pallas_src>
import functools
import math

import jax
import jax.numpy as jnp
from jax.experimental import pallas as pl
from jax.experimental.pallas import tpu as pltpu

N_EMBED = 64
N_HEAD = 4
HEAD_DIM = N_EMBED // N_HEAD
FF_DIM = 4 * N_EMBED
LN_EPS = 1e-5


def _layernorm(x, gamma, beta):
    # x: (rows, E) f32; gamma/beta: (1, E) f32
    mean = jnp.mean(x, axis=-1, keepdims=True)
    var = jnp.mean((x - mean) ** 2, axis=-1, keepdims=True)
    inv = jax.lax.rsqrt(var + LN_EPS)
    return (x - mean) * inv * gamma + beta


def transformer_block_kernel(
    x_ref,                 # (1, S, E)  f32
    wqkv_ref, bqkv_ref,    # (E, 3E) bf16 (Q cols pre-scaled by 1/sqrt(D)), (1, 3E) f32
    wo_ref, bo_ref,        # (E, E) bf16, (1, E) f32
    ln1g_ref, ln1b_ref,    # (1, E) f32
    w1_ref, b1_ref,        # (E, 4E) bf16, (1, 4E) f32
    w2_ref, b2_ref,        # (4E, E) bf16, (1, E) f32
    ln2g_ref, ln2b_ref,    # (1, E) f32
    o_ref,                 # (1, S, E)
):
    x = x_ref[0]                                        # (S, E) f32
    x_bf = x.astype(jnp.bfloat16)

    # ---- Fused QKV projection: ONE (S,E)@(E,3E) bf16 MXU pass, f32 accumulate ----
    qkv = jnp.dot(x_bf, wqkv_ref[...], preferred_element_type=jnp.float32)
    qkv = qkv + bqkv_ref[...]                           # (S, 3E) f32
    q = qkv[:, 0:N_EMBED]                               # 1/sqrt(D) already folded in
    k = qkv[:, N_EMBED:2 * N_EMBED]
    v = qkv[:, 2 * N_EMBED:3 * N_EMBED]

    # ---- Per-(head, batch) attention: softmax width is S, not H*B*S ----
    ctx_heads = []
    for h in range(N_HEAD):                             # H=4, unrolled at trace time
        lo, hi = h * HEAD_DIM, (h + 1) * HEAD_DIM
        qh = q[:, lo:hi].astype(jnp.bfloat16)           # (S, D)
        kh = k[:, lo:hi].astype(jnp.bfloat16)
        vh = v[:, lo:hi].astype(jnp.bfloat16)
        # QK^T contracting the head dim directly (no transpose materialized) -> (S, S) f32
        s = jax.lax.dot_general(qh, kh, (((1,), (1,)), ((), ())),
                                preferred_element_type=jnp.float32)
        s = s - jnp.max(s, axis=-1, keepdims=True)      # f32 softmax math
        p = jnp.exp(s)
        p = p * pl.reciprocal(jnp.sum(p, axis=-1, keepdims=True), approx=True)
        ctx_heads.append(jnp.dot(p.astype(jnp.bfloat16), vh,
                                 preferred_element_type=jnp.float32))   # (S, D) f32
    # TODO(synk): attention-weights dropout (p=0.1) omitted (eval-mode identity).

    # ---- Output projection: one lane concat + a single K=E matmul against wo ----
    ctx = jnp.concatenate(ctx_heads, axis=-1).astype(jnp.bfloat16)      # (S, E)
    attn = jnp.dot(ctx, wo_ref[...], preferred_element_type=jnp.float32) + bo_ref[...]

    # ---- Residual + LayerNorm 1 (f32) ----
    h1 = _layernorm(x + attn, ln1g_ref[...], ln1b_ref[...])

    # ---- Feed-forward: Linear -> ReLU -> Linear (bf16 operands, f32 accumulate) ----
    ff = jnp.dot(h1.astype(jnp.bfloat16), w1_ref[...],
                 preferred_element_type=jnp.float32) + b1_ref[...]      # (S, 4E)
    ff = jnp.maximum(ff, 0.0)
    ff = jnp.dot(ff.astype(jnp.bfloat16), w2_ref[...],
                 preferred_element_type=jnp.float32) + b2_ref[...]      # (S, E)
    # TODO(synk): FFN dropout (p=0.1) omitted (eval-mode identity).

    # ---- Residual + LayerNorm 2 ----
    out = _layernorm(h1 + ff, ln2g_ref[...], ln2b_ref[...])
    # TODO(synk): E=64 output is a half-lane (masked) store; at scale repack rows to a
    # 128-lane view for the LN/residual/store path.
    o_ref[0] = out.astype(o_ref.dtype)


def _cost_estimate(batch, seq):
    E, H, D, F = N_EMBED, N_HEAD, HEAD_DIM, FF_DIM
    flops = batch * (
        2 * seq * E * 3 * E                 # fused QKV
        + H * 2 * 2 * seq * seq * D         # QK^T + PV over all heads
        + 2 * seq * E * E                   # output projection
        + 2 * seq * E * F + 2 * seq * F * E # FFN
    )
    transcendentals = batch * (H * seq * seq + 2 * seq)      # exp + rsqrt
    bytes_accessed = (
        2 * batch * seq * E * 4                               # x in + out (f32)
        + (E * 3 * E + E * E + E * F + F * E) * 2             # bf16 weights
        + (3 * E + E + F + E + 4 * E) * 4                     # f32 biases + LN params
    )
    return pl.CostEstimate(flops=flops, transcendentals=transcendentals,
                           bytes_accessed=bytes_accessed)


@jax.jit
def transformer_block(x, kp):
    B, S, E = x.shape
    assert E == N_EMBED

    def full2d(shape):
        # Weight/bias blocks: same block every grid step -> stays resident in VMEM.
        return pl.BlockSpec(shape, lambda b: (0, 0))

    grid_spec = pltpu.PrefetchScalarGridSpec(
        num_scalar_prefetch=0,
        grid=(B,),
        in_specs=[
            pl.BlockSpec((1, S, E), lambda b: (b, 0, 0)),   # x: one batch row per step
            full2d((E, 3 * E)), full2d((1, 3 * E)),          # wqkv, bqkv
            full2d((E, E)), full2d((1, E)),                  # wo, bo
            full2d((1, E)), full2d((1, E)),                  # ln1 gamma/beta
            full2d((E, FF_DIM)), full2d((1, FF_DIM)),        # w1, b1
            full2d((FF_DIM, E)), full2d((1, E)),             # w2, b2
            full2d((1, E)), full2d((1, E)),                  # ln2 gamma/beta
        ],
        out_specs=pl.BlockSpec((1, S, E), lambda b: (b, 0, 0)),
    )
    return pl.pallas_call(
        transformer_block_kernel,
        out_shape=jax.ShapeDtypeStruct((B, S, E), x.dtype),
        grid_spec=grid_spec,
        compiler_params=pltpu.CompilerParams(
            dimension_semantics=("parallel",),            # batch rows -> both TCs on v7x
            vmem_limit_bytes=32 * 1024 * 1024),
        cost_estimate=_cost_estimate(B, S),
    )(x, kp["wqkv"], kp["bqkv"], kp["wo"], kp["bo"], kp["ln1g"], kp["ln1b"],
      kp["w1"], kp["b1"], kp["w2"], kp["b2"], kp["ln2g"], kp["ln2b"])


def init_params(key):
    ks = jax.random.split(key, 6)
    # PyTorch nn.Linear-style weights are (out, in); stored transposed (in, out).
    in_proj_w = jax.random.normal(ks[0], (3 * N_EMBED, N_EMBED), jnp.float32) * 0.05
    in_proj_b = jax.random.normal(ks[1], (3 * N_EMBED,), jnp.float32) * 0.02
    out_proj_w = jax.random.normal(ks[2], (N_EMBED, N_EMBED), jnp.float32) * 0.05
    out_proj_b = jnp.zeros((N_EMBED,), jnp.float32)
    w1 = jax.random.normal(ks[3], (FF_DIM, N_EMBED), jnp.float32) * 0.05
    b1 = jax.random.normal(ks[4], (FF_DIM,), jnp.float32) * 0.02
    w2 = jax.random.normal(ks[5], (N_EMBED, FF_DIM), jnp.float32) * 0.05
    b2 = jnp.zeros((N_EMBED,), jnp.float32)
    return {
        "wqkv": in_proj_w.T,                    # (E, 3E)
        "bqkv": in_proj_b.reshape(1, -1),       # (1, 3E)
        "wo": out_proj_w.T,                     # (E, E)
        "bo": out_proj_b.reshape(1, -1),        # (1, E)
        "ln1g": jnp.ones((1, N_EMBED), jnp.float32),
        "ln1b": jnp.zeros((1, N_EMBED), jnp.float32),
        "w1": w1.T,                             # (E, 4E)
        "b1": b1.reshape(1, -1),                # (1, 4E)
        "w2": w2.T,                             # (4E, E)
        "b2": b2.reshape(1, -1),                # (1, E)
        "ln2g": jnp.ones((1, N_EMBED), jnp.float32),
        "ln2b": jnp.zeros((1, N_EMBED), jnp.float32),
    }


def prepare_kernel_params(p):
    """One-time prep (NOT per call): fold 1/sqrt(D) into Q cols, cast weights to bf16."""
    scale = 1.0 / math.sqrt(HEAD_DIM)
    col_scale = jnp.concatenate(
        [jnp.full((N_EMBED,), scale, jnp.float32), jnp.ones((2 * N_EMBED,), jnp.float32)])
    return {
        "wqkv": (p["wqkv"] * col_scale[None, :]).astype(jnp.bfloat16),
        "bqkv": (p["bqkv"] * col_scale[None, :]).astype(jnp.float32),
        "wo": p["wo"].astype(jnp.bfloat16),
        "bo": p["bo"].astype(jnp.float32),
        "ln1g": p["ln1g"], "ln1b": p["ln1b"],
        "w1": p["w1"].astype(jnp.bfloat16),
        "b1": p["b1"].astype(jnp.float32),
        "w2": p["w2"].astype(jnp.bfloat16),
        "b2": p["b2"].astype(jnp.float32),
        "ln2g": p["ln2g"], "ln2b": p["ln2b"],
    }


def reference(x, p):
    # Pure-JAX f32 reference mirroring PyTorch MHA (eval mode) + block forward.
    B, S, E = x.shape
    qkv = x @ p["wqkv"] + p["bqkv"]                     # (B, S, 3E)
    q, k, v = jnp.split(qkv, 3, axis=-1)

    def split_heads(t):
        return t.reshape(B, S, N_HEAD, HEAD_DIM).transpose(0, 2, 1, 3)

    qh, kh, vh = split_heads(q), split_heads(k), split_heads(v)
    s = jnp.einsum("bhqd,bhkd->bhqk", qh, kh) / math.sqrt(HEAD_DIM)
    pmat = jax.nn.softmax(s, axis=-1)
    attn = jnp.einsum("bhqk,bhkd->bhqd", pmat, vh).transpose(0, 2, 1, 3).reshape(B, S, E)
    attn = attn @ p["wo"] + p["bo"]

    def ln(t, g, b):
        m = jnp.mean(t, -1, keepdims=True)
        var = jnp.mean((t - m) ** 2, -1, keepdims=True)
        return (t - m) * jax.lax.rsqrt(var + LN_EPS) * g + b

    h1 = ln(x + attn, p["ln1g"], p["ln1b"])
    ff = jnp.maximum(h1 @ p["w1"] + p["b1"], 0.0) @ p["w2"] + p["b2"]
    return ln(h1 + ff, p["ln2g"], p["ln2b"])


if __name__ == "__main__":
    key = jax.random.PRNGKey(0)
    kx, kparam = jax.random.split(key)
    B, S = 2, 8
    x = jax.random.normal(kx, (B, S, N_EMBED), jnp.float32)

    params = init_params(kparam)
    kernel_params = prepare_kernel_params(params)       # one-time: scale fold + bf16 cast

    out = jax.block_until_ready(transformer_block(x, kernel_params))
    ref = reference(x, params)

    assert out.shape == (B, S, N_EMBED)
    # Tolerance covers bf16 MXU operands (f32 accumulation) + approx softmax reciprocal.
    assert jnp.allclose(out, ref, atol=3e-2, rtol=3e-2), "mismatch vs reference"
    print("KERNEL_OK")
</pallas_src>

<mosaic_0001>
module attributes {stable_mosaic.version = 11 : i64} {
  func.func @transformer_block_kernel(%arg0: i32, %arg1: memref<1x8x64xf32, #tpu.memory_space<vmem>>, %arg2: memref<64x192xbf16, #tpu.memory_space<vmem>>, %arg3: memref<1x192xf32, #tpu.memory_space<vmem>>, %arg4: memref<64x64xbf16, #tpu.memory_space<vmem>>, %arg5: memref<1x64xf32, #tpu.memory_space<vmem>>, %arg6: memref<1x64xf32, #tpu.memory_space<vmem>>, %arg7: memref<1x64xf32, #tpu.memory_space<vmem>>, %arg8: memref<64x256xbf16, #tpu.memory_space<vmem>>, %arg9: memref<1x256xf32, #tpu.memory_space<vmem>>, %arg10: memref<256x64xbf16, #tpu.memory_space<vmem>>, %arg11: memref<1x64xf32, #tpu.memory_space<vmem>>, %arg12: memref<1x64xf32, #tpu.memory_space<vmem>>, %arg13: memref<1x64xf32, #tpu.memory_space<vmem>>, %arg14: memref<1x8x64xf32, #tpu.memory_space<vmem>>) attributes {dimension_semantics = [#tpu.dimension_semantics<parallel>], iteration_bounds = array<i64: 2>, scalar_prefetch = 0 : i64, scratch_operands = 0 : i64, tpu.core_type = #tpu.core_type<tc>, window_params = [{transform_indices = @transform_0, window_bounds = array<i64: 1, 8, 64>}, {pipeline_mode = #tpu.pipeline_mode<synchronous>, transform_indices = @transform_1, window_bounds = array<i64: 64, 192>}, {pipeline_mode = #tpu.pipeline_mode<synchronous>, transform_indices = @transform_2, window_bounds = array<i64: 1, 192>}, {pipeline_mode = #tpu.pipeline_mode<synchronous>, transform_indices = @transform_3, window_bounds = array<i64: 64, 64>}, {pipeline_mode = #tpu.pipeline_mode<synchronous>, transform_indices = @transform_4, window_bounds = array<i64: 1, 64>}, {pipeline_mode = #tpu.pipeline_mode<synchronous>, transform_indices = @transform_5, window_bounds = array<i64: 1, 64>}, {pipeline_mode = #tpu.pipeline_mode<synchronous>, transform_indices = @transform_6, window_bounds = array<i64: 1, 64>}, {pipeline_mode = #tpu.pipeline_mode<synchronous>, transform_indices = @transform_7, window_bounds = array<i64: 64, 256>}, {pipeline_mode = #tpu.pipeline_mode<synchronous>, transform_indices = @transform_8, window_bounds = array<i64: 1, 256>}, {pipeline_mode = #tpu.pipeline_mode<synchronous>, transform_indices = @transform_9, window_bounds = array<i64: 256, 64>}, {pipeline_mode = #tpu.pipeline_mode<synchronous>, transform_indices = @transform_10, window_bounds = array<i64: 1, 64>}, {pipeline_mode = #tpu.pipeline_mode<synchronous>, transform_indices = @transform_11, window_bounds = array<i64: 1, 64>}, {pipeline_mode = #tpu.pipeline_mode<synchronous>, transform_indices = @transform_12, window_bounds = array<i64: 1, 64>}, {transform_indices = @transform_13, window_bounds = array<i64: 1, 8, 64>}]} {
    %c0 = arith.constant 0 : index
    %c0_0 = arith.constant 0 : index
    %c0_1 = arith.constant 0 : index
    %0 = vector.load %arg1[%c0, %c0_0, %c0_1] : memref<1x8x64xf32, #tpu.memory_space<vmem>>, vector<1x8x64xf32>
    %1 = vector.shape_cast %0 : vector<1x8x64xf32> to vector<8x64xf32>
    %2 = arith.truncf %1 : vector<8x64xf32> to vector<8x64xbf16>
    %c0_2 = arith.constant 0 : index
    %c0_3 = arith.constant 0 : index
    %3 = vector.load %arg2[%c0_2, %c0_3] : memref<64x192xbf16, #tpu.memory_space<vmem>>, vector<64x192xbf16>
    %cst = arith.constant dense<0.000000e+00> : vector<8x192xf32>
    %4 = tpu.matmul %2, %3, %cst {dimension_numbers = #tpu.dot_dimension_numbers<[1], [0], [0], [1], [0, 0, 1, 1], [], []>} : vector<8x64xbf16>, vector<64x192xbf16>, vector<8x192xf32> -> vector<8x192xf32>
    %c0_4 = arith.constant 0 : index
    %c0_5 = arith.constant 0 : index
    %5 = vector.load %arg3[%c0_4, %c0_5] : memref<1x192xf32, #tpu.memory_space<vmem>>, vector<1x192xf32>
    %6 = vector.broadcast %5 : vector<1x192xf32> to vector<8x192xf32>
    %7 = arith.addf %4, %6 : vector<8x192xf32>
    %8 = vector.extract_strided_slice %7 {offsets = [0, 0], sizes = [8, 64], strides = [1, 1]} : vector<8x192xf32> to vector<8x64xf32>
    %9 = vector.extract_strided_slice %7 {offsets = [0, 64], sizes = [8, 64], strides = [1, 1]} : vector<8x192xf32> to vector<8x64xf32>
    %10 = vector.extract_strided_slice %7 {offsets = [0, 128], sizes = [8, 64], strides = [1, 1]} : vector<8x192xf32> to vector<8x64xf32>
    %11 = vector.extract_strided_slice %8 {offsets = [0, 0], sizes = [8, 16], strides = [1, 1]} : vector<8x64xf32> to vector<8x16xf32>
    %12 = arith.truncf %11 : vector<8x16xf32> to vector<8x16xbf16>
    %13 = vector.extract_strided_slice %9 {offsets = [0, 0], sizes = [8, 16], strides = [1, 1]} : vector<8x64xf32> to vector<8x16xf32>
    %14 = arith.truncf %13 : vector<8x16xf32> to vector<8x16xbf16>
    %15 = vector.extract_strided_slice %10 {offsets = [0, 0], sizes = [8, 16], strides = [1, 1]} : vector<8x64xf32> to vector<8x16xf32>
    %16 = arith.truncf %15 : vector<8x16xf32> to vector<8x16xbf16>
    %cst_6 = arith.constant dense<0.000000e+00> : vector<8x8xf32>
    %17 = tpu.matmul %12, %14, %cst_6 {dimension_numbers = #tpu.dot_dimension_numbers<[1], [1], [0], [0], [0, 0, 1, 0], [], []>} : vector<8x16xbf16>, vector<8x16xbf16>, vector<8x8xf32> -> vector<8x8xf32>
    %cst_7 = arith.constant dense<0xFF800000> : vector<8xf32>
    %18 = vector.multi_reduction <maximumf>, %17, %cst_7 [1] : vector<8x8xf32> to vector<8xf32>
    %19 = vector.shape_cast %18 : vector<8xf32> to vector<8x1xf32>
    %20 = vector.broadcast %19 : vector<8x1xf32> to vector<8x8xf32>
    %21 = arith.subf %17, %20 : vector<8x8xf32>
    %22 = math.exp %21 : vector<8x8xf32>
    %cst_8 = arith.constant dense<0.000000e+00> : vector<8xf32>
    %23 = vector.multi_reduction <add>, %22, %cst_8 [1] : vector<8x8xf32> to vector<8xf32>
    %24 = vector.shape_cast %23 : vector<8xf32> to vector<8x1xf32>
    %25 = tpu.reciprocal %24 {approx = true} : vector<8x1xf32> -> vector<8x1xf32>
    %26 = vector.broadcast %25 : vector<8x1xf32> to vector<8x8xf32>
    %27 = arith.mulf %22, %26 : vector<8x8xf32>
    %28 = arith.truncf %27 : vector<8x8xf32> to vector<8x8xbf16>
    %cst_9 = arith.constant dense<0.000000e+00> : vector<8x16xf32>
    %29 = tpu.matmul %28, %16, %cst_9 {dimension_numbers = #tpu.dot_dimension_numbers<[1], [0], [0], [1], [0, 0, 1, 1], [], []>} : vector<8x8xbf16>, vector<8x16xbf16>, vector<8x16xf32> -> vector<8x16xf32>
    %30 = vector.extract_strided_slice %8 {offsets = [0, 16], sizes = [8, 16], strides = [1, 1]} : vector<8x64xf32> to vector<8x16xf32>
    %31 = arith.truncf %30 : vector<8x16xf32> to vector<8x16xbf16>
    %32 = vector.extract_strided_slice %9 {offsets = [0, 16], sizes = [8, 16], strides = [1, 1]} : vector<8x64xf32> to vector<8x16xf32>
    %33 = arith.truncf %32 : vector<8x16xf32> to vector<8x16xbf16>
    %34 = vector.extract_strided_slice %10 {offsets = [0, 16], sizes = [8, 16], strides = [1, 1]} : vector<8x64xf32> to vector<8x16xf32>
    %35 = arith.truncf %34 : vector<8x16xf32> to vector<8x16xbf16>
    %cst_10 = arith.constant dense<0.000000e+00> : vector<8x8xf32>
    %36 = tpu.matmul %31, %33, %cst_10 {dimension_numbers = #tpu.dot_dimension_numbers<[1], [1], [0], [0], [0, 0, 1, 0], [], []>} : vector<8x16xbf16>, vector<8x16xbf16>, vector<8x8xf32> -> vector<8x8xf32>
    %cst_11 = arith.constant dense<0xFF800000> : vector<8xf32>
    %37 = vector.multi_reduction <maximumf>, %36, %cst_11 [1] : vector<8x8xf32> to vector<8xf32>
    %38 = vector.shape_cast %37 : vector<8xf32> to vector<8x1xf32>
    %39 = vector.broadcast %38 : vector<8x1xf32> to vector<8x8xf32>
    %40 = arith.subf %36, %39 : vector<8x8xf32>
    %41 = math.exp %40 : vector<8x8xf32>
    %cst_12 = arith.constant dense<0.000000e+00> : vector<8xf32>
    %42 = vector.multi_reduction <add>, %41, %cst_12 [1] : vector<8x8xf32> to vector<8xf32>
    %43 = vector.shape_cast %42 : vector<8xf32> to vector<8x1xf32>
    %44 = tpu.reciprocal %43 {approx = true} : vector<8x1xf32> -> vector<8x1xf32>
    %45 = vector.broadcast %44 : vector<8x1xf32> to vector<8x8xf32>
    %46 = arith.mulf %41, %45 : vector<8x8xf32>
    %47 = arith.truncf %46 : vector<8x8xf32> to vector<8x8xbf16>
    %cst_13 = arith.constant dense<0.000000e+00> : vector<8x16xf32>
    %48 = tpu.matmul %47, %35, %cst_13 {dimension_numbers = #tpu.dot_dimension_numbers<[1], [0], [0], [1], [0, 0, 1, 1], [], []>} : vector<8x8xbf16>, vector<8x16xbf16>, vector<8x16xf32> -> vector<8x16xf32>
    %49 = vector.extract_strided_slice %8 {offsets = [0, 32], sizes = [8, 16], strides = [1, 1]} : vector<8x64xf32> to vector<8x16xf32>
    %50 = arith.truncf %49 : vector<8x16xf32> to vector<8x16xbf16>
    %51 = vector.extract_strided_slice %9 {offsets = [0, 32], sizes = [8, 16], strides = [1, 1]} : vector<8x64xf32> to vector<8x16xf32>
    %52 = arith.truncf %51 : vector<8x16xf32> to vector<8x16xbf16>
    %53 = vector.extract_strided_slice %10 {offsets = [0, 32], sizes = [8, 16], strides = [1, 1]} : vector<8x64xf32> to vector<8x16xf32>
    %54 = arith.truncf %53 : vector<8x16xf32> to vector<8x16xbf16>
    %cst_14 = arith.constant dense<0.000000e+00> : vector<8x8xf32>
    %55 = tpu.matmul %50, %52, %cst_14 {dimension_numbers = #tpu.dot_dimension_numbers<[1], [1], [0], [0], [0, 0, 1, 0], [], []>} : vector<8x16xbf16>, vector<8x16xbf16>, vector<8x8xf32> -> vector<8x8xf32>
    %cst_15 = arith.constant dense<0xFF800000> : vector<8xf32>
    %56 = vector.multi_reduction <maximumf>, %55, %cst_15 [1] : vector<8x8xf32> to vector<8xf32>
    %57 = vector.shape_cast %56 : vector<8xf32> to vector<8x1xf32>
    %58 = vector.broadcast %57 : vector<8x1xf32> to vector<8x8xf32>
    %59 = arith.subf %55, %58 : vector<8x8xf32>
    %60 = math.exp %59 : vector<8x8xf32>
    %cst_16 = arith.constant dense<0.000000e+00> : vector<8xf32>
    %61 = vector.multi_reduction <add>, %60, %cst_16 [1] : vector<8x8xf32> to vector<8xf32>
    %62 = vector.shape_cast %61 : vector<8xf32> to vector<8x1xf32>
    %63 = tpu.reciprocal %62 {approx = true} : vector<8x1xf32> -> vector<8x1xf32>
    %64 = vector.broadcast %63 : vector<8x1xf32> to vector<8x8xf32>
    %65 = arith.mulf %60, %64 : vector<8x8xf32>
    %66 = arith.truncf %65 : vector<8x8xf32> to vector<8x8xbf16>
    %cst_17 = arith.constant dense<0.000000e+00> : vector<8x16xf32>
    %67 = tpu.matmul %66, %54, %cst_17 {dimension_numbers = #tpu.dot_dimension_numbers<[1], [0], [0], [1], [0, 0, 1, 1], [], []>} : vector<8x8xbf16>, vector<8x16xbf16>, vector<8x16xf32> -> vector<8x16xf32>
    %68 = vector.extract_strided_slice %8 {offsets = [0, 48], sizes = [8, 16], strides = [1, 1]} : vector<8x64xf32> to vector<8x16xf32>
    %69 = arith.truncf %68 : vector<8x16xf32> to vector<8x16xbf16>
    %70 = vector.extract_strided_slice %9 {offsets = [0, 48], sizes = [8, 16], strides = [1, 1]} : vector<8x64xf32> to vector<8x16xf32>
    %71 = arith.truncf %70 : vector<8x16xf32> to vector<8x16xbf16>
    %72 = vector.extract_strided_slice %10 {offsets = [0, 48], sizes = [8, 16], strides = [1, 1]} : vector<8x64xf32> to vector<8x16xf32>
    %73 = arith.truncf %72 : vector<8x16xf32> to vector<8x16xbf16>
    %cst_18 = arith.constant dense<0.000000e+00> : vector<8x8xf32>
    %74 = tpu.matmul %69, %71, %cst_18 {dimension_numbers = #tpu.dot_dimension_numbers<[1], [1], [0], [0], [0, 0, 1, 0], [], []>} : vector<8x16xbf16>, vector<8x16xbf16>, vector<8x8xf32> -> vector<8x8xf32>
    %cst_19 = arith.constant dense<0xFF800000> : vector<8xf32>
    %75 = vector.multi_reduction <maximumf>, %74, %cst_19 [1] : vector<8x8xf32> to vector<8xf32>
    %76 = vector.shape_cast %75 : vector<8xf32> to vector<8x1xf32>
    %77 = vector.broadcast %76 : vector<8x1xf32> to vector<8x8xf32>
    %78 = arith.subf %74, %77 : vector<8x8xf32>
    %79 = math.exp %78 : vector<8x8xf32>
    %cst_20 = arith.constant dense<0.000000e+00> : vector<8xf32>
    %80 = vector.multi_reduction <add>, %79, %cst_20 [1] : vector<8x8xf32> to vector<8xf32>
    %81 = vector.shape_cast %80 : vector<8xf32> to vector<8x1xf32>
    %82 = tpu.reciprocal %81 {approx = true} : vector<8x1xf32> -> vector<8x1xf32>
    %83 = vector.broadcast %82 : vector<8x1xf32> to vector<8x8xf32>
    %84 = arith.mulf %79, %83 : vector<8x8xf32>
    %85 = arith.truncf %84 : vector<8x8xf32> to vector<8x8xbf16>
    %cst_21 = arith.constant dense<0.000000e+00> : vector<8x16xf32>
    %86 = tpu.matmul %85, %73, %cst_21 {dimension_numbers = #tpu.dot_dimension_numbers<[1], [0], [0], [1], [0, 0, 1, 1], [], []>} : vector<8x8xbf16>, vector<8x16xbf16>, vector<8x16xf32> -> vector<8x16xf32>
    %87 = tpu.concatenate %29, %48, %67, %86 in 1 : vector<8x16xf32>, vector<8x16xf32>, vector<8x16xf32>, vector<8x16xf32> -> vector<8x64xf32>
    %88 = arith.truncf %87 : vector<8x64xf32> to vector<8x64xbf16>
    %c0_22 = arith.constant 0 : index
    %c0_23 = arith.constant 0 : index
    %89 = vector.load %arg4[%c0_22, %c0_23] : memref<64x64xbf16, #tpu.memory_space<vmem>>, vector<64x64xbf16>
    %cst_24 = arith.constant dense<0.000000e+00> : vector<8x64xf32>
    %90 = tpu.matmul %88, %89, %cst_24 {dimension_numbers = #tpu.dot_dimension_numbers<[1], [0], [0], [1], [0, 0, 1, 1], [], []>} : vector<8x64xbf16>, vector<64x64xbf16>, vector<8x64xf32> -> vector<8x64xf32>
    %c0_25 = arith.constant 0 : index
    %c0_26 = arith.constant 0 : index
    %91 = vector.load %arg5[%c0_25, %c0_26] : memref<1x64xf32, #tpu.memory_space<vmem>>, vector<1x64xf32>
    %92 = vector.broadcast %91 : vector<1x64xf32> to vector<8x64xf32>
    %93 = arith.addf %90, %92 : vector<8x64xf32>
    %94 = arith.addf %1, %93 : vector<8x64xf32>
    %c0_27 = arith.constant 0 : index
    %c0_28 = arith.constant 0 : index
    %95 = vector.load %arg6[%c0_27, %c0_28] : memref<1x64xf32, #tpu.memory_space<vmem>>, vector<1x64xf32>
    %c0_29 = arith.constant 0 : index
    %c0_30 = arith.constant 0 : index
    %96 = vector.load %arg7[%c0_29, %c0_30] : memref<1x64xf32, #tpu.memory_space<vmem>>, vector<1x64xf32>
    %cst_31 = arith.constant dense<0.000000e+00> : vector<8xf32>
    %97 = vector.multi_reduction <add>, %94, %cst_31 [1] : vector<8x64xf32> to vector<8xf32>
    %98 = vector.shape_cast %97 : vector<8xf32> to vector<8x1xf32>
    %cst_32 = arith.constant 6.400000e+01 : f32
    %99 = vector.broadcast %cst_32 : f32 to vector<8x1xf32>
    %100 = arith.divf %98, %99 : vector<8x1xf32>
    %101 = vector.broadcast %100 : vector<8x1xf32> to vector<8x64xf32>
    %102 = arith.subf %94, %101 : vector<8x64xf32>
    %103 = arith.mulf %102, %102 : vector<8x64xf32>
    %cst_33 = arith.constant dense<0.000000e+00> : vector<8xf32>
    %104 = vector.multi_reduction <add>, %103, %cst_33 [1] : vector<8x64xf32> to vector<8xf32>
    %105 = vector.shape_cast %104 : vector<8xf32> to vector<8x1xf32>
    %cst_34 = arith.constant 6.400000e+01 : f32
    %106 = vector.broadcast %cst_34 : f32 to vector<8x1xf32>
    %107 = arith.divf %105, %106 : vector<8x1xf32>
    %cst_35 = arith.constant 9.99999974E-6 : f32
    %108 = vector.broadcast %cst_35 : f32 to vector<8x1xf32>
    %109 = arith.addf %107, %108 : vector<8x1xf32>
    %110 = math.rsqrt %109 : vector<8x1xf32>
    %111 = vector.broadcast %100 : vector<8x1xf32> to vector<8x64xf32>
    %112 = arith.subf %94, %111 : vector<8x64xf32>
    %113 = vector.broadcast %110 : vector<8x1xf32> to vector<8x64xf32>
    %114 = arith.mulf %112, %113 : vector<8x64xf32>
    %115 = vector.broadcast %95 : vector<1x64xf32> to vector<8x64xf32>
    %116 = arith.mulf %114, %115 : vector<8x64xf32>
    %117 = vector.broadcast %96 : vector<1x64xf32> to vector<8x64xf32>
    %118 = arith.addf %116, %117 : vector<8x64xf32>
    %119 = arith.truncf %118 : vector<8x64xf32> to vector<8x64xbf16>
    %c0_36 = arith.constant 0 : index
    %c0_37 = arith.constant 0 : index
    %120 = vector.load %arg8[%c0_36, %c0_37] : memref<64x256xbf16, #tpu.memory_space<vmem>>, vector<64x256xbf16>
    %cst_38 = arith.constant dense<0.000000e+00> : vector<8x256xf32>
    %121 = tpu.matmul %119, %120, %cst_38 {dimension_numbers = #tpu.dot_dimension_numbers<[1], [0], [0], [1], [0, 0, 1, 1], [], []>} : vector<8x64xbf16>, vector<64x256xbf16>, vector<8x256xf32> -> vector<8x256xf32>
    %c0_39 = arith.constant 0 : index
    %c0_40 = arith.constant 0 : index
    %122 = vector.load %arg9[%c0_39, %c0_40] : memref<1x256xf32, #tpu.memory_space<vmem>>, vector<1x256xf32>
    %123 = vector.broadcast %122 : vector<1x256xf32> to vector<8x256xf32>
    %124 = arith.addf %121, %123 : vector<8x256xf32>
    %cst_41 = arith.constant 0.000000e+00 : f32
    %125 = vector.broadcast %cst_41 : f32 to vector<8x256xf32>
    %126 = arith.maximumf %124, %125 : vector<8x256xf32>
    %127 = arith.truncf %126 : vector<8x256xf32> to vector<8x256xbf16>
    %c0_42 = arith.constant 0 : index
    %c0_43 = arith.constant 0 : index
    %128 = vector.load %arg10[%c0_42, %c0_43] : memref<256x64xbf16, #tpu.memory_space<vmem>>, vector<256x64xbf16>
    %cst_44 = arith.constant dense<0.000000e+00> : vector<8x64xf32>
    %129 = tpu.matmul %127, %128, %cst_44 {dimension_numbers = #tpu.dot_dimension_numbers<[1], [0], [0], [1], [0, 0, 1, 1], [], []>} : vector<8x256xbf16>, vector<256x64xbf16>, vector<8x64xf32> -> vector<8x64xf32>
    %c0_45 = arith.constant 0 : index
    %c0_46 = arith.constant 0 : index
    %130 = vector.load %arg11[%c0_45, %c0_46] : memref<1x64xf32, #tpu.memory_space<vmem>>, vector<1x64xf32>
    %131 = vector.broadcast %130 : vector<1x64xf32> to vector<8x64xf32>
    %132 = arith.addf %129, %131 : vector<8x64xf32>
    %133 = arith.addf %118, %132 : vector<8x64xf32>
    %c0_47 = arith.constant 0 : index
    %c0_48 = arith.constant 0 : index
    %134 = vector.load %arg12[%c0_47, %c0_48] : memref<1x64xf32, #tpu.memory_space<vmem>>, vector<1x64xf32>
    %c0_49 = arith.constant 0 : index
    %c0_50 = arith.constant 0 : index
    %135 = vector.load %arg13[%c0_49, %c0_50] : memref<1x64xf32, #tpu.memory_space<vmem>>, vector<1x64xf32>
    %cst_51 = arith.constant dense<0.000000e+00> : vector<8xf32>
    %136 = vector.multi_reduction <add>, %133, %cst_51 [1] : vector<8x64xf32> to vector<8xf32>
    %137 = vector.shape_cast %136 : vector<8xf32> to vector<8x1xf32>
    %cst_52 = arith.constant 6.400000e+01 : f32
    %138 = vector.broadcast %cst_52 : f32 to vector<8x1xf32>
    %139 = arith.divf %137, %138 : vector<8x1xf32>
    %140 = vector.broadcast %139 : vector<8x1xf32> to vector<8x64xf32>
    %141 = arith.subf %133, %140 : vector<8x64xf32>
    %142 = arith.mulf %141, %141 : vector<8x64xf32>
    %cst_53 = arith.constant dense<0.000000e+00> : vector<8xf32>
    %143 = vector.multi_reduction <add>, %142, %cst_53 [1] : vector<8x64xf32> to vector<8xf32>
    %144 = vector.shape_cast %143 : vector<8xf32> to vector<8x1xf32>
    %cst_54 = arith.constant 6.400000e+01 : f32
    %145 = vector.broadcast %cst_54 : f32 to vector<8x1xf32>
    %146 = arith.divf %144, %145 : vector<8x1xf32>
    %cst_55 = arith.constant 9.99999974E-6 : f32
    %147 = vector.broadcast %cst_55 : f32 to vector<8x1xf32>
    %148 = arith.addf %146, %147 : vector<8x1xf32>
    %149 = math.rsqrt %148 : vector<8x1xf32>
    %150 = vector.broadcast %139 : vector<8x1xf32> to vector<8x64xf32>
    %151 = arith.subf %133, %150 : vector<8x64xf32>
    %152 = vector.broadcast %149 : vector<8x1xf32> to vector<8x64xf32>
    %153 = arith.mulf %151, %152 : vector<8x64xf32>
    %154 = vector.broadcast %134 : vector<1x64xf32> to vector<8x64xf32>
    %155 = arith.mulf %153, %154 : vector<8x64xf32>
    %156 = vector.broadcast %135 : vector<1x64xf32> to vector<8x64xf32>
    %157 = arith.addf %155, %156 : vector<8x64xf32>
    %c0_56 = arith.constant 0 : index
    %c0_57 = arith.constant 0 : index
    %c0_58 = arith.constant 0 : index
    %158 = vector.load %arg14[%c0_56, %c0_57, %c0_58] : memref<1x8x64xf32, #tpu.memory_space<vmem>>, vector<1x8x64xf32>
    %159 = vector.shape_cast %158 : vector<1x8x64xf32> to vector<8x64xf32>
    %160 = vector.shape_cast %157 : vector<8x64xf32> to vector<1x8x64xf32>
    tpu.vector_store %arg14[%c0_56, %c0_57, %c0_58], %160 {strides = array<i32>} : memref<1x8x64xf32, #tpu.memory_space<vmem>>, vector<1x8x64xf32>,
    return
  }
  func.func @transform_0(%arg0: i32) -> (i32, i32, i32) {
    %c0_i32 = arith.constant 0 : i32
    %c0_i32_0 = arith.constant 0 : i32
    %c0_i32_1 = arith.constant 0 : i32
    return %arg0, %c0_i32, %c0_i32_0 : i32, i32, i32
  }
  func.func @transform_1(%arg0: i32) -> (i32, i32) {
    %c0_i32 = arith.constant 0 : i32
    %c0_i32_0 = arith.constant 0 : i32
    %c0_i32_1 = arith.constant 0 : i32
    return %c0_i32, %c0_i32_0 : i32, i32
  }
  func.func @transform_2(%arg0: i32) -> (i32, i32) {
    %c0_i32 = arith.constant 0 : i32
    %c0_i32_0 = arith.constant 0 : i32
    %c0_i32_1 = arith.constant 0 : i32
    return %c0_i32, %c0_i32_0 : i32, i32
  }
  func.func @transform_3(%arg0: i32) -> (i32, i32) {
    %c0_i32 = arith.constant 0 : i32
    %c0_i32_0 = arith.constant 0 : i32
    %c0_i32_1 = arith.constant 0 : i32
    return %c0_i32, %c0_i32_0 : i32, i32
  }
  func.func @transform_4(%arg0: i32) -> (i32, i32) {
    %c0_i32 = arith.constant 0 : i32
    %c0_i32_0 = arith.constant 0 : i32
    %c0_i32_1 = arith.constant 0 : i32
    return %c0_i32, %c0_i32_0 : i32, i32
  }
  func.func @transform_5(%arg0: i32) -> (i32, i32) {
    %c0_i32 = arith.constant 0 : i32
    %c0_i32_0 = arith.constant 0 : i32
    %c0_i32_1 = arith.constant 0 : i32
    return %c0_i32, %c0_i32_0 : i32, i32
  }
  func.func @transform_6(%arg0: i32) -> (i32, i32) {
    %c0_i32 = arith.constant 0 : i32
    %c0_i32_0 = arith.constant 0 : i32
    %c0_i32_1 = arith.constant 0 : i32
    return %c0_i32, %c0_i32_0 : i32, i32
  }
  func.func @transform_7(%arg0: i32) -> (i32, i32) {
    %c0_i32 = arith.constant 0 : i32
    %c0_i32_0 = arith.constant 0 : i32
    %c0_i32_1 = arith.constant 0 : i32
    return %c0_i32, %c0_i32_0 : i32, i32
  }
  func.func @transform_8(%arg0: i32) -> (i32, i32) {
    %c0_i32 = arith.constant 0 : i32
    %c0_i32_0 = arith.constant 0 : i32
    %c0_i32_1 = arith.constant 0 : i32
    return %c0_i32, %c0_i32_0 : i32, i32
  }
  func.func @transform_9(%arg0: i32) -> (i32, i32) {
    %c0_i32 = arith.constant 0 : i32
    %c0_i32_0 = arith.constant 0 : i32
    %c0_i32_1 = arith.constant 0 : i32
    return %c0_i32, %c0_i32_0 : i32, i32
  }
  func.func @transform_10(%arg0: i32) -> (i32, i32) {
    %c0_i32 = arith.constant 0 : i32
    %c0_i32_0 = arith.constant 0 : i32
    %c0_i32_1 = arith.constant 0 : i32
    return %c0_i32, %c0_i32_0 : i32, i32
  }
  func.func @transform_11(%arg0: i32) -> (i32, i32) {
    %c0_i32 = arith.constant 0 : i32
    %c0_i32_0 = arith.constant 0 : i32
    %c0_i32_1 = arith.constant 0 : i32
    return %c0_i32, %c0_i32_0 : i32, i32
  }
  func.func @transform_12(%arg0: i32) -> (i32, i32) {
    %c0_i32 = arith.constant 0 : i32
    %c0_i32_0 = arith.constant 0 : i32
    %c0_i32_1 = arith.constant 0 : i32
    return %c0_i32, %c0_i32_0 : i32, i32
  }
  func.func @transform_13(%arg0: i32) -> (i32, i32, i32) {
    %c0_i32 = arith.constant 0 : i32
    %c0_i32_0 = arith.constant 0 : i32
    %c0_i32_1 = arith.constant 0 : i32
    return %arg0, %c0_i32, %c0_i32_0 : i32, i32, i32
  }
}

</mosaic_0001>

<bundles_post_ra>
// kernel: transformer_block.1
= control target key start
LH: loop header
LB: loop body
LE: loop exit
PB: predicated region body
PF: predicated region fallthrough
CT: control target
= control target key end

     0   :  { %18 = vsyncpa [#allocation3], 0  ;;  %s2247_s0 = inlined_call_operand.vmem [shape: f32[2,8,64], index: 0, kind: input, shape index: {}]   ;;  %s2248_s1 = inlined_call_operand.vmem [shape: bf16[64,192], index: 1, kind: input, shape index: {}]   ;;  %s2249_s2 = inlined_call_operand.vmem [shape: f32[1,192], index: 2, kind: input, shape index: {}]   ;;  %s2250_s3 = inlined_call_operand.vmem [shape: bf16[64,64], index: 3, kind: input, shape index: {}]   ;;  %s2251_s4 = inlined_call_operand.vmem [shape: f32[1,64], index: 4, kind: input, shape index: {}]   ;;  %s2252_s5 = inlined_call_operand.vmem [shape: f32[1,64], index: 5, kind: input, shape index: {}]   ;;  %s2253_s6 = inlined_call_operand.vmem [shape: f32[1,64], index: 6, kind: input, shape index: {}]   ;;  %s2254_s7 = inlined_call_operand.vmem [shape: bf16[64,256], index: 7, kind: input, shape index: {}]   ;;  %s2255_s8 = inlined_call_operand.vmem [shape: f32[1,256], index: 8, kind: input, shape index: {}]   ;;  %s2256_s9 = inlined_call_operand.vmem [shape: bf16[256,64], index: 9, kind: input, shape index: {}]   ;;  %s2257_s10 = inlined_call_operand.vmem [shape: f32[1,64], index: 10, kind: input, shape index: {}]   ;;  %s2258_s11 = inlined_call_operand.vmem [shape: f32[1,64], index: 11, kind: input, shape index: {}]   ;;  %s2259_s12 = inlined_call_operand.vmem [shape: f32[1,64], index: 12, kind: input, shape index: {}]   ;;  %s2260_s13 = inlined_call_operand.hbm [shape: f32[2,8,64], index: 13, kind: output, shape index: {}]  }
   0x1   :  { %20 = vsyncpa [#allocation3 + $0x1], 0  ;;  %s1928_s25 = smov 0   ;;  %s1930_s26 = smov 0  }
   0x2   :  { %s1932_s27 = smov 0   ;;  %s1934_s28 = smov 0  }
   0x3 LB: > { %2266 = sst [smem:[#allocation5_spill]] %s1833_s25  ;;  %s1949_s29 = sadd.s32 4294967295, %s1845_s28   ;;  %s1845_s28 = sphi %s1934_s28, %s2275_s28   ;;  %s1841_s27 = sphi %s1932_s27, %s2277_s27   ;;  %s1837_s26 = sphi %s1930_s26, %s2279_s26   ;;  %s1833_s25 = sphi %s1928_s25, %s2278_s25  }
   0x4   : > { %2267 = sst [smem:[#allocation6_spill]] %s1841_s27  ;;  %s1506_s30 = sadd.s32 4294967294, %s1845_s28  }
   0x5   : > { %s1953_s14 = sadd.s32 1, %s1845_s28   ;;  %s311_s15 = sadd.s32 1, %s1841_s27 }
   0x6   : > { %2268 = sst [smem:[#allocation7_spill]] %s1953_s14  ;;  %s308_s16 = ssub.s32 %s1845_s28, %s1953_s14 }
   0x7   : > { %p321_p0 = scmp.ne.s32.totalorder %s1841_s27, %s1837_s26  ;;  %p309_p1 = scmp.eq.s32.totalorder %s308_s16, 0 }
   0x8   : > { %p322_p2 = scmp.eq.s32.totalorder %s1949_s29, 1  ;;  %p327_p3 = scmp.ne.s32.totalorder %s1837_s26, %s1833_s25 }
   0x9   : > { %p328_p4 = scmp.eq.s32.totalorder %s1506_s30, 1  ;;  %p1509_p7 = scmp.ge.s32.totalorder %s1845_s28, 1 }
   0xa   : > { %s1964_s17 = scalar_select %p309_p1, %s1841_s27, %s311_s15  }
   0xb   : > { %p1966_p5 = por %p322_p2, %p321_p0  ;;  %p1970_p6 = por %p328_p4, %p327_p3 }
   0xc   : > { %2269 = sst [smem:[#allocation8_spill]] %s1964_s17  ;;  %p389_p8 = scmp.lt.s32.totalorder %s1845_s28, 3 }
   0xd   : > { %s2271_s19 = scalar_select %p1970_p6, 1, 0 }
   0xe   : > { %p390_p9 = pnand %p1509_p7, %p389_p8 }
   0xf   : > { %2272 = sst [smem:[#allocation9_spill]] %s2271_s19  ;;  %p432_p10 = scmp.lt.s32.totalorder (!%p390_p9), %s1949_s29, 1 }
  0x10   : > { %393 = sbr.rel (%p390_p9) target bundleno = 2464 (0x9a0), region = 72  ;;  %s1850_s14 = smov (!%p390_p9), 112  }
  0x11   : > { %s1851_s17 = smov (!%p390_p9), 64   ;;  %s1852_s19 = smov (!%p390_p9), 32  }
  0x12   : > { %s1854_s21 = smov (!%p390_p9), 16   ;;  %s1856_s23 = smov (!%p390_p9), 80  }
  0x13   : > { %s429_s30 = sand.u32 (!%p390_p9), 1, %s1837_s26  }
  0x14   : > { %s1510_s16 = sshll.u32 (!%p390_p9), %s429_s30, 3  ;;  %s1434_s24 = scalar_lea.sflag (!%p390_p9), [#allocation3], %s429_s30 }
  0x15   : > { %v1721_v0 = vld [vmem:[%s2248_s1 + $0x34] ss:$8 sps:$4 sm:$0xff]   ;;  %v1723_v1 = vld [vmem:[%s2248_s1 + $0x30] ss:$8 sps:$4 sm:$0xff]   ;;  %v1847_v2 = vmov 0   ;;  %s433_s15 = scalar_select %p432_p10, %s1949_s29, 1  ;;  %v449_v11 = vlaneseq }
  0x16   : > { %535 = vmatprep.mubr.bf16.mxu1 %v1847_v2  ;;  %511 = vmatprep.subr.bf16.mxu1 %v1721_v0  ;;  %v1724_v3 = vld [vmem:[%s2248_s1 + $0x24] ss:$8 sps:$4 sm:$0xff]   ;;  %v1726_v4 = vld [vmem:[%s2248_s1 + $0x20] ss:$8 sps:$4 sm:$0xff]   ;;  %v1727_v5 = vld [vmem:[%s2248_s1 + $0x14] ss:$8 sps:$4 sm:$0xff]  }
  0x17   : > { %512 = vmatpush1.bf16.msra.mxu1 %v1723_v1  ;;  %s1511_s22 = sshll.u32 %s433_s15, 3  ;;  %v1729_v6 = vld [vmem:[%s2248_s1 + $0x10] ss:$8 sps:$4 sm:$0xff]   ;;  %v1730_v7 = vld [vmem:[%s2248_s1 + $0x4] ss:$8 sps:$4 sm:$0xff]   ;;  %vm499_vm0 = vcmask 523264  }
  0x18   : > { %513 = vmatprep.subr.bf16.mxu1 %v1724_v3  ;;  %s435_s25 = scalar_lea.vmem %s2247_s0, %s1511_s22  ;;  %v1732_v8 = vld [vmem:[%s2248_s1] ss:$8 sps:$4 sm:$0xff]   ;;  %v2011_v12 = vshrl.u32 %v449_v11, 7  ;;  %v1848_v13 = vmov 0.0   ;;  %vm1849_vm1 = vmmov 0   ;;  %s1853_s15 = smov 48  }
  0x19   : > { %v2006_v9 = vld [vmem:[%s435_s25] sm:$0xff]  ;;  %1624 = vmatprep.subr.bf16.mxu0 %v1848_v13  ;;  %1626 = vmatprep.mubr.msk.bf16.mxu0 %vm1849_vm1, %v1848_v13  ;;  %s1855_s22 = smov 96   ;;  %vm549_vm2 = vcmask 130048   ;;  %vm612_vm3 = vcmask 1043456   ;;  %vm596_vm4 = vcmask 64512   ;;  %vm1000_vm5 = vcmask 261120  }
  0x1a   : > { %v438_v10 = vpack.c.bf16 %v2006_v9, %v2006_v9  ;;  %v451_v14 = vsub.s32 0, %v2011_v12  ;;  %v447_v15 = vld [vmem:[%s2249_s2] sm:$0x3]  ;;  %v455_v23 = vsub.s32 1, %v2011_v12  ;;  %vm1002_vm6 = vcmask 392192   ;;  %s1857_s25 = smov [#allocation2]  }
  0x1b   : > { %514 = vmatpush1.bf16.msra.mxu1 %v1726_v4  ;;  %s1789_s27 = sshll.u32 %s1857_s25, 4  ;;  %s1790_s27 = int_to_ptr.vmem [resolvable:$false] %s1789_s27 }
  0x1c   : > { %515 = vmatprep.subr.bf16.mxu1 %v1727_v5  ;;  %v452_v16 = vrot.slane %v447_v15, %v451_v14  ;;  %v456_v24 = vrot.slane %v447_v15, %v455_v23 }
  0x1f   : > { %516 = vmatpush1.bf16.msra.mxu1 %v1729_v6 }
  0x20   : > { %517 = vmatprep.subr.bf16.mxu1 %v1730_v7 }
  0x23   : > { %518 = vmatpush1.bf16.msra.mxu1 %v1732_v8 }
  0x24   : > { %1612 = vmatprep.subr.bf16.mxu1 %v1848_v13 }
  0x26   : > { %1520 = vmatmul.mubr.msk.bf16.vlgmr.msra.gmra.mxu1 %vm499_vm0, %v438_v10 }
  0x27   : > { %1614 = vmatprep.mubr.msk.bf16.mxu1 %vm1849_vm1, %v1848_v13 }
  0xe6   : > { %v537_v17 = vpop.f32.mrf.mxu1 }
  0xe7   : > { %v538_v18 = vadd.f32 %v537_v17, %v452_v16 }
  0xe8   : > { %v539_v19 = vpop.f32.mrf.mxu1 }
  0xe9   : > { %v544_v20 = vpack.c.bf16 %v538_v18, %v538_v18  ;;  %v540_v26 = vadd.f32 %v539_v19, %v456_v24 }
  0xea   : > { %v541_v21 = vpop.f32.mrf.mxu1 }
  0xeb   : > { %656 = vrot.lane.b32.xlu1 %v544_v20, %s1850_s14  ;;  %547 = vrot.lane.b32.xlu0 %v544_v20, %s1851_s17  ;;  %v2036_v30 = vpack.c.bf16 %v540_v26, %v540_v26  ;;  %s1566_s17 = sshll.u32 %s1949_s29, 7  ;;  %s1791_s29 = scalar_lea.vmem %s1790_s27, 256 }
  0xec   : > { %v542_v22 = vpop.f32.mrf.mxu1 }
  0xed   : > { %v614_v32 = vsel %vm612_vm3, %v2036_v30, 0 }
  0xef   : > { %769 = vrot.lane.b32.xlu1 %v544_v20, %s1852_s19  ;;  %658 = vrot.lane.b32.xlu0 %v544_v20, %s1853_s15 }
  0xf3   : > { %879 = vrot.lane.b32.xlu1 %v544_v20, %s1854_s21  ;;  %767 = vrot.lane.b32.xlu0 %v544_v20, %s1855_s22 }
  0xf7   : > { %877 = vrot.lane.b32.xlu0 %v544_v20, %s1856_s23 }
 0x15d   : > { %v548_v25 = vpop.permute.xlu0 %547  ;;  %v657_v28 = vpop.permute.xlu1 %656 }
 0x15e   : > { %v554_v27 = vsel %vm549_vm2, %v548_v25, 0 }
 0x15f   : > { %1613 = vmatpush3.bf16.xpose.msra.mxu1 %v554_v27 }
 0x160   : > { %1618 = vmatprep.subr.bf16.mxu1 %v1848_v13 }
 0x161   : > { %v659_v29 = vpop.permute.xlu0 %658  ;;  %v770_v33 = vpop.permute.xlu1 %769 }
 0x162   : > { %v664_v31 = vsel %vm549_vm2, %v659_v29, 0  ;;  %v775_v34 = vsel %vm549_vm2, %v770_v33, 0 }
 0x163   : > { %1625 = vmatpush3.bf16.xpose.msra.mxu0 %v664_v31 }
 0x164   : > { %1636 = vmatprep.subr.bf16.mxu0 %v1848_v13 }
 0x165   : > { %v880_v35 = vpop.permute.xlu1 %879  ;;  %v768_v36 = vpop.permute.xlu0 %767 }
 0x166   : > { %1615 = vmatmul.mubr.msk.bf16.vlgmr.msra.gmra.mxu1 %vm549_vm2, %v544_v20  ;;  %v885_v37 = vsel %vm549_vm2, %v880_v35, 0 }
 0x167   : > { %1619 = vmatpush3.bf16.msra.mxu1 %v614_v32  ;;  %1620 = vmatprep.mubr.msk.bf16.mxu1 %vm1849_vm1, %v1848_v13 }
 0x168   : > { %1630 = vmatprep.subr.bf16.mxu1 %v1848_v13 }
 0x169   : > { %v878_v38 = vpop.permute.xlu0 %877 }
 0x16a   : > { %1627 = vmatmul.mubr.msk.bf16.vlgmr.msra.gmra.mxu0 %vm549_vm2, %v657_v28 }
 0x16b   : > { %1637 = vmatpush3.bf16.xpose.msra.mxu0 %v775_v34  ;;  %1638 = vmatprep.mubr.msk.bf16.mxu0 %vm1849_vm1, %v1848_v13 }
 0x16c   : > { %1648 = vmatprep.subr.bf16.mxu0 %v1848_v13 }
 0x172   : > { %1639 = vmatmul.mubr.msk.bf16.vlgmr.msra.gmra.mxu0 %vm549_vm2, %v768_v36 }
 0x173   : > { %1649 = vmatpush3.bf16.xpose.msra.mxu0 %v885_v37  ;;  %1650 = vmatprep.mubr.msk.bf16.mxu0 %vm1849_vm1, %v1848_v13 }
 0x174   : > { %1660 = vmatprep.subr.bf16.mxu0 %v1848_v13 }
 0x17a   : > { %1651 = vmatmul.mubr.msk.bf16.vlgmr.msra.gmra.mxu0 %vm549_vm2, %v878_v38 }
 0x17b   : > { %1668 = vmatprep.mubr.msk.bf16.mxu0 %vm1849_vm1, %v1848_v13 }
 0x226   : > { %v590_v39 = vpop.f32.mrf.mxu1 }
 0x227   : > { %v597_v40 = vsel %vm596_vm4, %v590_v39, -inf }
 0x228   : > { %598 = vmax.xlane.f32.xlu1 %v597_v40  ;;  %v1616_v41 = vpop.f32.mrf.mxu1 }
 0x22a   : > { %v593_v42 = vpop.f32.mrf.mxu1  ;;  %v700_v43 = vpop.f32.mrf.mxu0 }
 0x22b   : > { %v706_v44 = vsel %vm596_vm4, %v700_v43, -inf }
 0x22c   : > { %v1617_v45 = vpop.f32.mrf.mxu1  ;;  %707 = vmax.xlane.f32.xlu0 %v706_v44  ;;  %v1628_v46 = vpop.f32.mrf.mxu0 }
 0x22d   : > { %v1733_v46 = vld [vmem:[%s2250_s3 + $0x18] sm:$0xff]  }
 0x22e   : > { %v703_v47 = vpop.f32.mrf.mxu0  ;;  %1661 = vmatpush3.bf16.msra.mxu0 %v1733_v46  ;;  %v1535_v46 = vld [vmem:[%s2252_s5] ss:$0 sm:$0xff] }
 0x22f   : > { %1662 = vmatprep.subr.bf16.mxu0 %v1848_v13 }
 0x230   : > { %v1629_v48 = vpop.f32.mrf.mxu0 }
 0x231   : > { %v1734_v48 = vld [vmem:[%s2250_s3 + $0x10] sm:$0xff]  }
 0x232   : > { %v811_v49 = vpop.f32.mrf.mxu0  ;;  %1663 = vmatpush3.bf16.msra.mxu0 %v1734_v48  ;;  %v1536_v48 = vld [vmem:[%s2253_s6] ss:$0 sm:$0xff] }
 0x233   : > { %v817_v50 = vsel %vm596_vm4, %v811_v49, -inf  ;;  %1664 = vmatprep.subr.bf16.mxu0 %v1848_v13 }
 0x234   : > { %818 = vmax.xlane.f32.xlu0 %v817_v50  ;;  %v1640_v51 = vpop.f32.mrf.mxu0 }
 0x236   : > { %v814_v52 = vpop.f32.mrf.mxu0 }
 0x238   : > { %v1641_v53 = vpop.f32.mrf.mxu0 }
 0x23a   : > { %v921_v54 = vpop.f32.mrf.mxu0 }
 0x23b   : > { %v927_v55 = vsel %vm596_vm4, %v921_v54, -inf }
 0x23c   : > { %928 = vmax.xlane.f32.xlu1 %v927_v55  ;;  %v1652_v56 = vpop.f32.mrf.mxu0 }
 0x23e   : > { %v924_v57 = vpop.f32.mrf.mxu0 }
 0x23f   : > { %v1736_v57 = vld [vmem:[%s2250_s3] sm:$0xff]  }
 0x240   : > { %v1653_v58 = vpop.f32.mrf.mxu0 }
 0x2b1   : > { %v599_v59 = vpop.xlane.xlu1 %598 }
 0x2b2   : > { %v600_v60 = vsub.f32 %v590_v39, %v599_v59 }
 0x2b4   : > { %v601_v61 = vmul.f32 1.442695, %v600_v60 }
 0x2b5   : > { %v708_v62 = vpop.xlane.xlu0 %707 }
 0x2b6   : > { %1765 = vpow2.f32 %v601_v61  ;;  %v709_v63 = vsub.f32 %v700_v43, %v708_v62 }
 0x2b8   : > { %v710_v0 = vmul.f32 1.442695, %v709_v63 }
 0x2ba   : > { %1767 = vpow2.f32 %v710_v0 }
 0x2bd   : > { %v819_v1 = vpop.xlane.xlu0 %818 }
 0x2be   : > { %v820_v3 = vsub.f32 %v811_v49, %v819_v1 }
 0x2c0   : > { %v821_v4 = vmul.f32 1.442695, %v820_v3 }
 0x2c2   : > { %1769 = vpow2.f32 %v821_v4 }
 0x2c3   : > { %v1766_v5 = vpop.eup %1765 }
 0x2c4   : > { %v603_v6 = vsel %vm596_vm4, %v1766_v5, 0.0 }
 0x2c5   : > { %604 = vadd.xlane.f32.xlu0 %v603_v6  ;;  %v929_v15 = vpop.xlane.xlu1 %928 }
 0x2c6   : > { %v930_v16 = vsub.f32 %v921_v54, %v929_v15 }
 0x2c7   : > { %v1768_v7 = vpop.eup %1767 }
 0x2c8   : > { %v712_v8 = vsel %vm596_vm4, %v1768_v7, 0.0  ;;  %v931_v17 = vmul.f32 1.442695, %v930_v16 }
 0x2c9   : > { %713 = vadd.xlane.f32.xlu1 %v712_v8 }
 0x2ca   : > { %1771 = vpow2.f32 %v931_v17 }
 0x2cf   : > { %v1770_v10 = vpop.eup %1769 }
 0x2d0   : > { %v823_v11 = vsel %vm596_vm4, %v1770_v10, 0.0 }
 0x2d1   : > { %824 = vadd.xlane.f32.xlu0 %v823_v11 }
 0x2d7   : > { %v1772_v18 = vpop.eup %1771 }
 0x2d8   : > { %v933_v19 = vsel %vm596_vm4, %v1772_v18, 0.0 }
 0x2da   : > { %829 = vrot.lane.b32.xlu1 %v2036_v30, %s1855_s22 }
 0x2e7   : > { %719 = vrot.lane.b32.xlu0 %v2036_v30, %s1850_s14 }
 0x2fe   : > { %934 = vadd.xlane.f32.xlu1 %v933_v19 }
 0x30f   : > { %939 = vrot.lane.b32.xlu1 %v2036_v30, %s1856_s23  ;;  %s1445_s23 = scalar_lea.hbm %s2260_s13, %s1566_s17 }
 0x34e   : > { %v605_v20 = vpop.xlane.xlu0 %604 }
 0x34f   : > { %1773 = vrcp.f32 %v605_v20 }
 0x352   : > { %v714_v21 = vpop.xlane.xlu1 %713 }
 0x353   : > { %1775 = vrcp.f32 %v714_v21 }
 0x356   : > { %v830_v31 = vpop.permute.xlu1 %829 }
 0x357   : > { %v835_v34 = vsel %vm612_vm3, %v830_v31, 0  ;;  %v1750_v31 = vld [vmem:[%s2256_s9 + $0x38] sm:$0xff]  }
 0x35a   : > { %v825_v22 = vpop.xlane.xlu0 %824 }
 0x35b   : > { %1777 = vrcp.f32 %v825_v22  ;;  %v1739_v22 = vld [vmem:[%s2254_s7 + $0x34] ss:$8 sps:$4 sm:$0xff]  }
 0x35c   : > { %v1774_v24 = vpop.eup %1773 }
 0x35d   : > { %v607_v25 = vmul.f32 %v1774_v24, %v1766_v5  ;;  %v1529_v5 = vld [vmem:[%s2251_s4] ss:$0 sm:$0xff]  ;;  %v1742_v24 = vld [vmem:[%s2254_s7 + $0x24] ss:$8 sps:$4 sm:$0xff]  }
 0x35e   : > { %v720_v26 = vpop.permute.xlu0 %719 }
 0x35f   : > { %v725_v27 = vsel %vm612_vm3, %v720_v26, 0  ;;  %v608_v28 = vpack.c.bf16 %v607_v25, %v607_v25  ;;  %v1740_v25 = vld [vmem:[%s2254_s7 + $0x20] ss:$8 sps:$4 sm:$0xff]   ;;  %v1745_v26 = vld [vmem:[%s2254_s7 + $0x14] ss:$8 sps:$4 sm:$0xff]  }
 0x360   : > { %v1776_v29 = vpop.eup %1775 }
 0x361   : > { %1621 = vmatmul.mubr.msk.bf16.vlgmr.msra.gmra.mxu1 %vm596_vm4, %v608_v28  ;;  %v716_v30 = vmul.f32 %v1776_v29, %v1768_v7  ;;  %v1748_v28 = vld [vmem:[%s2254_s7 + $0x4] ss:$8 sps:$4 sm:$0xff]   ;;  %v1746_v29 = vld [vmem:[%s2254_s7] ss:$8 sps:$4 sm:$0xff]  }
 0x362   : > { %1631 = vmatpush3.bf16.msra.mxu1 %v725_v27  ;;  %1632 = vmatprep.mubr.msk.bf16.mxu1 %vm1849_vm1, %v1848_v13  ;;  %v1743_v27 = vld [vmem:[%s2254_s7 + $0x10] ss:$8 sps:$4 sm:$0xff]  }
 0x363   : > { %1642 = vmatprep.subr.bf16.mxu1 %v1848_v13  ;;  %v717_v32 = vpack.c.bf16 %v716_v30, %v716_v30  ;;  %v1749_v30 = vld [vmem:[%s2256_s9 + $0x78] sm:$0xff]  }
 0x368   : > { %v1778_v33 = vpop.eup %1777 }
 0x369   : > { %1633 = vmatmul.mubr.msk.bf16.vlgmr.msra.gmra.mxu1 %vm596_vm4, %v717_v32  ;;  %v827_v35 = vmul.f32 %v1778_v33, %v1770_v10  ;;  %v1751_v32 = vld [vmem:[%s2256_s9 + $0x70] sm:$0xff]  }
 0x36a   : > { %1643 = vmatpush3.bf16.msra.mxu1 %v835_v34  ;;  %1644 = vmatprep.mubr.msk.bf16.mxu1 %vm1849_vm1, %v1848_v13  ;;  %v1752_v33 = vld [vmem:[%s2256_s9 + $0x30] sm:$0xff]   ;;  %v1753_v34 = vld [vmem:[%s2256_s9 + $0x68] sm:$0xff]  }
 0x36b   : > { %1654 = vmatprep.subr.bf16.mxu1 %v1848_v13  ;;  %v828_v36 = vpack.c.bf16 %v827_v35, %v827_v35  ;;  %v1754_v35 = vld [vmem:[%s2256_s9 + $0x28] sm:$0xff]  }
 0x371   : > { %1645 = vmatmul.mubr.msk.bf16.vlgmr.msra.gmra.mxu1 %vm596_vm4, %v828_v36  ;;  %v1755_v36 = vld [vmem:[%s2256_s9 + $0x60] sm:$0xff]  }
 0x372   : > { %1656 = vmatprep.mubr.msk.bf16.mxu1 %vm1849_vm1, %v1848_v13 }
 0x387   : > { %v935_v37 = vpop.xlane.xlu1 %934 }
 0x388   : > { %1779 = vrcp.f32 %v935_v37  ;;  %v1756_v37 = vld [vmem:[%s2256_s9 + $0x20] sm:$0xff]  }
 0x38b   : > { %v940_v38 = vpop.permute.xlu1 %939 }
 0x38c   : > { %v945_v39 = vsel %vm612_vm3, %v940_v38, 0  ;;  %v1757_v38 = vld [vmem:[%s2256_s9 + $0x58] sm:$0xff]  }
 0x38d   : > { %1655 = vmatpush3.bf16.msra.mxu1 %v945_v39  ;;  %v1758_v39 = vld [vmem:[%s2256_s9 + $0x18] sm:$0xff]  }
 0x38e   : > { %1190 = vmatprep.subr.bf16.mxu1 %v1739_v22 }
 0x395   : > { %v1780_v40 = vpop.eup %1779 }
 0x396   : > { %v937_v41 = vmul.f32 %v1780_v40, %v1772_v18  ;;  %v1759_v40 = vld [vmem:[%s2256_s9 + $0x50] sm:$0xff]  }
 0x398   : > { %v938_v42 = vpack.c.bf16 %v937_v41, %v937_v41  ;;  %v1760_v41 = vld [vmem:[%s2256_s9 + $0x10] sm:$0xff]  }
 0x39a   : > { %1657 = vmatmul.mubr.msk.bf16.vlgmr.msra.gmra.mxu1 %vm596_vm4, %v938_v42 }
 0x39b   : > { %1214 = vmatprep.mubr.bf16.mxu1 %v1847_v2  ;;  %v1735_v2 = vld [vmem:[%s2250_s3 + $0x8] sm:$0xff]  }
 0x39c   : > { %1665 = vmatpush3.bf16.msra.mxu0 %v1735_v2 }
 0x39d   : > { %1666 = vmatprep.subr.bf16.mxu0 %v1848_v13 }
 0x3a0   : > { %1667 = vmatpush3.bf16.msra.mxu0 %v1736_v57 }
 0x3a1   : > { %1590 = vmatprep.subr.bf16.mxu0 %v1749_v30 }
 0x421   : > { %v650_v43 = vpop.f32.mrf.mxu1 }
 0x423   : > { %v1622_v44 = vpop.f32.mrf.mxu1 }
 0x425   : > { %v653_v45 = vpop.f32.mrf.mxu1 }
 0x427   : > { %v1623_v47 = vpop.f32.mrf.mxu1 }
 0x429   : > { %v761_v49 = vpop.f32.mrf.mxu1 }
 0x42a   : > { %988 = vrot.lane.b32.xlu0 %v761_v49, %s1854_s21 }
 0x42b   : > { %v1634_v50 = vpop.f32.mrf.mxu1 }
 0x42d   : > { %v764_v51 = vpop.f32.mrf.mxu1 }
 0x42e   : > { %v1761_v51 = vld [vmem:[%s2256_s9 + $0x48] sm:$0xff]  }
 0x42f   : > { %v1635_v52 = vpop.f32.mrf.mxu1 }
 0x430   : > { %v1762_v52 = vld [vmem:[%s2256_s9 + $0x8] sm:$0xff]  }
 0x431   : > { %v871_v53 = vpop.f32.mrf.mxu1 }
 0x432   : > { %992 = vrot.lane.b32.xlu1 %v871_v53, %s1852_s19  ;;  %v1763_v53 = vld [vmem:[%s2256_s9 + $0x40] sm:$0xff]   ;;  %s431_s19 = scalar_lea.vmem [#allocation2], %s1510_s16 }
 0x433   : > { %v1646_v54 = vpop.f32.mrf.mxu1  ;;  %s1447_s21 = sshll.u32 %s431_s19, 4  ;;  %s1448_s21 = int_to_ptr.vmem [resolvable:$true] %s1447_s21 }
 0x434   : > { %v1764_v54 = vld [vmem:[%s2256_s9] sm:$0xff]   ;;  %s1785_s20 = scalar_lea.vmem %s1448_s21, 128  ;;  %p1792_p0 = scmp.lt.s32.totalorder %s1448_s21, %s1790_s27 }
 0x435   : > { %v874_v55 = vpop.f32.mrf.mxu1  ;;  %p1786_p11 = scmp.ne.s32.totalorder %s1448_s21, %s1785_s20  ;;  %p1793_p1 = scmp.lt.s32.totalorder %s1791_s29, %s1785_s20 }
 0x436   : > { %v1127_v55 = vld [vmem:[%s2255_s8] sm:$0x3] }
 0x437   : > { %v1647_v56 = vpop.f32.mrf.mxu1  ;;  %v1136_v57 = vrot.slane %v1127_v55, %v455_v23  ;;  %p1787_p12 = pnand %p1786_p11, %p1966_p5  ;;  %p1794_p2 = por %p1793_p1, %p1792_p0 }
 0x438   : > { %v1132_v56 = vrot.slane %v1127_v55, %v451_v14  ;;  %v1546_v14 = vld [vmem:[%s2257_s10] ss:$0 sm:$0xff] }
 0x439   : > { %p1788_p13 = pneg %p1787_p12 }
 0x43b   : > { %p1795_p3 = pnand %p1794_p2, %p1788_p13 }
 0x45a   : > { %v981_v58 = vpop.f32.mrf.mxu1 }
 0x45b   : > { %996 = vrot.lane.b32.xlu0 %v981_v58, %s1853_s15 }
 0x45c   : > { %v1658_v59 = vpop.f32.mrf.mxu1 }
 0x45e   : > { %v984_v60 = vpop.f32.mrf.mxu1 }
 0x460   : > { %v1659_v61 = vpop.f32.mrf.mxu1 }
 0x49c   : > { %v989_v62 = vpop.permute.xlu0 %988 }
 0x49d   : > { %v999_v63 = vsel %vm549_vm2, %v650_v43, %v989_v62 }
 0x4a4   : > { %v993_v13 = vpop.permute.xlu1 %992 }
 0x4a5   : > { %v1001_v0 = vsel %vm1000_vm5, %v999_v63, %v993_v13 }
 0x4cd   : > { %v997_v1 = vpop.permute.xlu0 %996 }
 0x4ce   : > { %v1003_v3 = vsel %vm1002_vm6, %v1001_v0, %v997_v1 }
 0x4cf   : > { %v1004_v4 = vpack.c.bf16 %v1003_v3, %v1003_v3 }
 0x4d1   : > { %1669 = vmatmul.mubr.msk.bf16.vlgmr.msra.gmra.mxu0 %vm499_vm0, %v1004_v4 }
 0x4d2   : > { %1591 = vmatpush3.bf16.msra.mxu0 %v1750_v31 }
 0x4d3   : > { %1592 = vmatprep.subr.bf16.mxu0 %v1751_v32 }
 0x4d6   : > { %1593 = vmatpush3.bf16.msra.mxu0 %v1752_v33 }
 0x4d7   : > { %1594 = vmatprep.subr.bf16.mxu0 %v1753_v34 }
 0x4da   : > { %1595 = vmatpush3.bf16.msra.mxu0 %v1754_v35 }
 0x4db   : > { %1596 = vmatprep.subr.bf16.mxu0 %v1755_v36 }
 0x4de   : > { %1597 = vmatpush3.bf16.msra.mxu0 %v1756_v37 }
 0x4df   : > { %1598 = vmatprep.subr.bf16.mxu0 %v1757_v38 }
 0x4e2   : > { %1599 = vmatpush3.bf16.msra.mxu0 %v1758_v39 }
 0x4e3   : > { %1600 = vmatprep.subr.bf16.mxu0 %v1759_v40 }
 0x4e6   : > { %1601 = vmatpush3.bf16.msra.mxu0 %v1760_v41 }
 0x4e7   : > { %1602 = vmatprep.subr.bf16.mxu0 %v1761_v51 }
 0x4ea   : > { %1603 = vmatpush3.bf16.msra.mxu0 %v1762_v52 }
 0x4eb   : > { %1604 = vmatprep.subr.bf16.mxu0 %v1763_v53 }
 0x4ee   : > { %1605 = vmatpush3.bf16.msra.mxu0 %v1764_v54 }
 0x591   : > { %v1081_v6 = vpop.f32.mrf.mxu0 }
 0x592   : > { %v1082_v7 = vadd.f32 %v1529_v5, %v1081_v6 }
 0x593   : > { %v1670_v8 = vpop.f32.mrf.mxu0 }
 0x594   : > { %v1087_v10 = vadd.f32 %v1082_v7, %v2006_v9  ;;  %v1737_v9 = vld [vmem:[%s2254_s7 + $0x30] ss:$8 sps:$4 sm:$0xff]  }
 0x595   : > { %v1084_v11 = vpop.f32.mrf.mxu0  ;;  %1191 = vmatpush1.bf16.msra.mxu1 %v1737_v9  ;;  %v1563_v9 = vld [vmem:[%s2258_s11] ss:$0 sm:$0xff] }
 0x596   : > { %v1090_v15 = vsel %vm499_vm0, %v1087_v10, 0.0  ;;  %1192 = vmatprep.subr.bf16.mxu1 %v1742_v24 }
 0x597   : > { %1091 = vadd.xlane.f32.xlu1 %v1090_v15  ;;  %v1671_v16 = vpop.f32.mrf.mxu0 }
 0x599   : > { %1193 = vmatpush1.bf16.msra.mxu1 %v1740_v25  ;;  %v1564_v25 = vld [vmem:[%s2259_s12] ss:$0 sm:$0xff] }
 0x59a   : > { %1194 = vmatprep.subr.bf16.mxu1 %v1745_v26 }
 0x59d   : > { %1195 = vmatpush1.bf16.msra.mxu1 %v1743_v27 }
 0x59e   : > { %1196 = vmatprep.subr.bf16.mxu1 %v1748_v28 }
 0x5a1   : > { %1197 = vmatpush1.bf16.msra.mxu1 %v1746_v29 }
 0x620   : > { %v1092_v17 = vpop.xlane.xlu1 %1091 }
 0x621   : > { %v1094_v18 = vmul.f32 0.015625, %v1092_v17 }
 0x623   : > { %v1095_v19 = vsub.f32 %v1087_v10, %v1094_v18 }
 0x625   : > { %v1096_v20 = vmul.f32 %v1095_v19, %v1095_v19 }
 0x627   : > { %v1097_v21 = vsel %vm499_vm0, %v1096_v20, 0.0 }
 0x628   : > { %1098 = vadd.xlane.f32.xlu0 %v1097_v21 }
 0x6b1   : > { %v1099_v42 = vpop.xlane.xlu0 %1098 }
 0x6b2   : > { %v1100_v43 = vmul.f32 0.015625, %v1099_v42 }
 0x6b4   : > { %v1101_v44 = vadd.f32 1e-05, %v1100_v43 }
 0x6b6   : > { %1781 = vrsqrt.f32 %v1101_v44 }
 0x6c3   : > { %v1782_v45 = vpop.eup %1781 }
 0x6c4   : > { %v1103_v47 = vmul.f32 %v1782_v45, %v1095_v19 }
 0x6c6   : > { %v1110_v49 = vmul.f32 %v1535_v46, %v1103_v47 }
 0x6c8   : > { %v1117_v50 = vadd.f32 %v1536_v48, %v1110_v49 }
 0x6ca   : > { %v1118_v2 = vpack.c.bf16 %v1117_v50, %v1117_v50 }
 0x6cc   : > { %1545 = vmatmul.mubr.msk.bf16.vlgmr.msra.gmra.mxu1 %vm499_vm0, %v1118_v2 }
 0x78c   : > { %v1216_v58 = vpop.f32.mrf.mxu1 }
 0x78d   : > { %v1217_v59 = vadd.f32 %v1216_v58, %v1132_v56 }
 0x78e   : > { %v1218_v60 = vpop.f32.mrf.mxu1 }
 0x78f   : > { %v1219_v61 = vadd.f32 %v1218_v60, %v1136_v57  ;;  %v1223_v62 = vmax.f32 %v1217_v59, 0.0 }
 0x790   : > { %v1220_v13 = vpop.f32.mrf.mxu1 }
 0x791   : > { %v1224_v63 = vmax.f32 %v1219_v61, 0.0  ;;  %v1225_v3 = vpack.c.bf16 %v1223_v62, %v1223_v62 }
 0x792   : > { %v1221_v0 = vpop.f32.mrf.mxu1 }
 0x793   : > { %v1226_v1 = vpack.c.bf16 %v1224_v63, %v1224_v63 }
 0x795   : > { %1394 = vmatprep.mubr.bf16.mxu0 %v1226_v1 }
 0x796   : > { %1395 = vmatmul.mubr.bf16.vlgmr.msra.gmra.mxu0 %v1225_v3 }
 0x856   : > { %v1606_v4 = vpop.f32.mrf.mxu0 }
 0x858   : > { %v1607_v5 = vpop.f32.mrf.mxu0 }
 0x859   : > { %v1608_v12 = vadd.f32 %v1607_v5, %v1606_v4 }
 0x85a   : > { %v1609_v23 = vpop.f32.mrf.mxu0 }
 0x85b   : > { %v1397_v6 = vadd.f32 %v1608_v12, %v1546_v14 }
 0x85c   : > { %v1610_v7 = vpop.f32.mrf.mxu0 }
 0x85d   : > { %v1402_v8 = vadd.f32 %v1397_v6, %v1117_v50 }
 0x85f   : > { %v1405_v10 = vsel %vm499_vm0, %v1402_v8, 0.0 }
 0x860   : > { %1406 = vadd.xlane.f32.xlu0 %v1405_v10 }
 0x8e9   : > { %v1407_v11 = vpop.xlane.xlu0 %1406 }
 0x8ea   : > { %v1408_v15 = vmul.f32 0.015625, %v1407_v11 }
 0x8ec   : > { %v1409_v16 = vsub.f32 %v1402_v8, %v1408_v15 }
 0x8ee   : > { %v1410_v17 = vmul.f32 %v1409_v16, %v1409_v16 }
 0x8f0   : > { %v1411_v18 = vsel %vm499_vm0, %v1410_v17, 0.0 }
 0x8f1   : > { %1412 = vadd.xlane.f32.xlu1 %v1411_v18 }
 0x97a   : > { %v1413_v19 = vpop.xlane.xlu1 %1412 }
 0x97b   : > { %v1414_v20 = vmul.f32 0.015625, %v1413_v19 }
 0x97d   : > { %v1415_v21 = vadd.f32 1e-05, %v1414_v20 }
 0x97f   : > { %1783 = vrsqrt.f32 %v1415_v21 }
 0x98c   : > { %v1784_v22 = vpop.eup %1783 }
 0x98d   : > { %v1417_v24 = vmul.f32 %v1784_v22, %v1409_v16 }
 0x98f   : > { %v1424_v26 = vmul.f32 %v1563_v9, %v1417_v24 }
 0x991   : > { %v1431_v27 = vadd.f32 %v1564_v25, %v1424_v26 }
 0x993   : > { %1432 = vst.msk [vmem:[%s431_s19] sm:$0xff] %vm499_vm0, %v1431_v27 }
 0x994   : > { %1798 = shalt.err (!%p1795_p3)
}
 0x995   : > { %s1799_s16 = scalar_lea.hbm %s1445_s23, 128  ;;  %s1803_s17 = scalar_lea.hbm %s2260_s13, 256 }
 0x996   : > { %p1800_p4 = scmp.ne.s32.totalorder %s1445_s23, %s1799_s16  ;;  %p1804_p9 = scmp.lt.s32.totalorder %s1445_s23, %s2260_s13 }
 0x997   : > { %p1805_p10 = scmp.lt.s32.totalorder %s1803_s17, %s1799_s16 }
 0x998   : > { %p1801_p7 = pnand %p1800_p4, %p1966_p5 }
 0x999   : > { %p1806_p11 = por %p1805_p10, %p1804_p9 }
 0x99a   : > { %p1802_p8 = pneg %p1801_p7 }
 0x99c   : > { %p1807_p12 = pnand %p1806_p11, %p1802_p8 }
 0x99e   : > { %1810 = shalt.err (!%p1807_p12)
}
 0x99f   : > { %1672 = dma.vmem_to_hbm [thread:$0]  (%p1966_p5), %s1448_s21, 128, %s1445_s23, %s1434_s24  }
 0x9a0 PF: > { %s2273_s22 = sld [smem:[#allocation5_spill]]  ;;  %p1678_p13 = scmp.ge.s32.totalorder %s1845_s28, 2 }
 0x9a2   : > { %p1675_p0 = pnand %p1678_p13, %p1970_p6 }
 0x9a4   : > { %p1676_p1 = pneg %p1675_p0 }
 0x9a6   : > { %s1459_s25 = sand.u32 1, %s2273_s22  }
 0x9a7   : > { %s1460_s27 = scalar_lea.sflag [#allocation3], %s1459_s25 }
 0x9a8   : > { %1828 = dma.done.wait (%p1676_p1), %s1460_s27, 128  }
 0x9a9   : > { %1830 = vsyncadd (%p1676_p1), %s1460_s27, 4294967168  ;;  %s2275_s28 = sld [smem:[#allocation7_spill]]  ;;  %s2278_s25 = smov %s1837_s26 }
 0x9aa   : > { %s2276_s29 = sld [smem:[#allocation6_spill]] }
 0x9ab   : > { %s2277_s27 = sld [smem:[#allocation8_spill]] }
 0x9af   : > { %p23_p2 = scmp.ge.s32.totalorder %s2275_s28, 4  }
 0x9b0   : > { %s2279_s26 = smov %s2276_s29 }
 0x9b1   :  { %25 = sbr.rel (!%p23_p2) target bundleno = 3 (0x3), region = 107 }
 0x9b6   :  { %1465 = vsyncpa [#allocation3], 1 }
 0x9b7   :  { %1467 = vsyncpa [#allocation3 + $0x1], 1 }

</bundles_post_ra>
